<compile_context>
chip_gen: v7x
topology: tpu7x:2x2x1
jax: 0.10.0
libtpu: 0.0.40
codegen_flags: <defaults>
</compile_context>

<pallas_src>
import functools

import jax
import jax.numpy as jnp
from jax.experimental import pallas as pl
from jax.experimental.pallas import tpu as pltpu

LANES = 128
ACC_SUBLANES = 8                        # f32 accumulator tile: (8, 128) = 1 vreg
_BLOCK_BYTES_BUDGET = 4 * 1024 * 1024   # per input, per pipeline buffer
_VMEM_LIMIT_BYTES = 32 * 1024 * 1024    # 2 inputs x 2 buffers x 4 MiB = 16 MiB << 32 MiB


def _round_up(x, m):
    return ((x + m - 1) // m) * m


def _cdiv(a, b):
    return (a + b - 1) // b


def _min_sublanes(dtype):
    """Minimum sublane tile for a dtype: f32 -> 8, bf16/f16 -> 16, int8/fp8 -> 32."""
    itemsize = jnp.dtype(dtype).itemsize
    if itemsize >= 4:
        return 8
    if itemsize == 2:
        return 16
    return 32


def _num_core_splits():
    """2 TensorCores per chip on v7x; 1 elsewhere."""
    try:
        kind = jax.devices()[0].device_kind.lower()
    except Exception:
        return 1
    return 2 if "v7" in kind else 1


def _algebraic_loss_kernel(y_ref, yp_ref, out_ref, acc_ref, *,
                           rows, row_tile, blocks_per_core):
    c = pl.program_id(0)          # core-split index   ("parallel")
    i = pl.program_id(1)          # reduction step      ("arbitrary")

    @pl.when(i == 0)
    def _init():
        acc_ref[...] = jnp.zeros_like(acc_ref)

    # Unclamped global start row of this step's block.  Interior blocks have
    # remaining >= row_tile (unmasked fast path); the single ragged tail block
    # has 0 < remaining < row_tile (masked); index-clamped redundant blocks of
    # the second core split have remaining <= 0 and skip compute entirely.
    start_row = (c * blocks_per_core + i) * row_tile
    remaining = rows - start_row

    def block_value():
        ey = y_ref[...].astype(jnp.float32) - yp_ref[...].astype(jnp.float32)
        e2 = ey * ey
        # e2 / sqrt(1 + e2) == e2 * rsqrt(1 + e2): one EUP op + one VPU mul.
        return e2 * jax.lax.rsqrt(jnp.float32(1.0) + e2)

    def accumulate(val):
        # Fold into an (8, 128) vreg-shaped accumulator: per-step work is pure
        # VPU adds; the cross-sublane/lane reduce happens once, on the last step.
        acc_ref[...] += val.reshape(
            row_tile // ACC_SUBLANES, ACC_SUBLANES, LANES).sum(axis=0)

    @pl.when(remaining >= row_tile)
    def _interior():
        accumulate(block_value())

    @pl.when(jnp.logical_and(remaining > 0, remaining < row_tile))
    def _tail():
        val = block_value()
        row_ids = jax.lax.broadcasted_iota(jnp.int32, (row_tile, LANES), 0)
        # NOTE: must stay a select (NOT multiply-by-mask): out-of-bounds rows of
        # a partial trailing block are unspecified and may hold NaN/Inf.
        val = jnp.where(row_ids < remaining, val, jnp.float32(0.0))
        accumulate(val)

    @pl.when(i == pl.num_programs(1) - 1)
    def _finalize():
        out_ref[0, 0] = jnp.sum(acc_ref[...])


def algebraic_loss(y_t, y_prime_t):
    """Pallas TPU implementation of mean(ey^2 / sqrt(1 + ey^2)), ey = y - y'."""
    assert y_t.shape == y_prime_t.shape
    n_true = int(y_t.size)
    if n_true == 0:
        return jnp.float32(0.0)

    y = jnp.ravel(y_t)
    yp = jnp.ravel(y_prime_t)

    n_main = (n_true // LANES) * LANES      # lane-aligned prefix handled by kernel
    n_tail = n_true - n_main                # <=127 leftover elements handled in jnp

    total = jnp.float32(0.0)

    if n_main:
        rows = n_main // LANES
        sub = max(_min_sublanes(y.dtype), _min_sublanes(yp.dtype))
        itemsize = max(jnp.dtype(y.dtype).itemsize, jnp.dtype(yp.dtype).itemsize)

        # Tile rows from the per-buffer VMEM budget (8192 for f32, 16384 for
        # bf16), rounded to the dtype's minimum sublane tile.
        max_tile_rows = _BLOCK_BYTES_BUDGET // (LANES * itemsize)
        row_tile = min(max_tile_rows, _round_up(rows, sub))
        row_tile = _round_up(row_tile, sub)

        num_blocks = _cdiv(rows, row_tile)
        num_splits = min(_num_core_splits(), num_blocks)
        blocks_per_core = _cdiv(num_blocks, num_splits)

        y2d = y[:n_main].reshape(rows, LANES)
        yp2d = yp[:n_main].reshape(rows, LANES)

        def in_index(c, i):
            # Clamp so redundant steps of a second split re-read the last valid
            # block (always in-bounds DMA); their compute is skipped in-kernel.
            blk = c * blocks_per_core + i
            return (jnp.minimum(blk, num_blocks - 1), 0)

        kernel = functools.partial(
            _algebraic_loss_kernel,
            rows=rows, row_tile=row_tile, blocks_per_core=blocks_per_core)

        in_bytes = (y2d.size * jnp.dtype(y2d.dtype).itemsize
                    + yp2d.size * jnp.dtype(yp2d.dtype).itemsize)
        cost = pl.CostEstimate(flops=5 * n_main,
                               transcendentals=n_main,
                               bytes_accessed=in_bytes + 4 * num_splits)

        partials = pl.pallas_call(
            kernel,
            out_shape=jax.ShapeDtypeStruct((num_splits, 1), jnp.float32),
            grid_spec=pltpu.PrefetchScalarGridSpec(
                num_scalar_prefetch=0,
                grid=(num_splits, blocks_per_core),
                in_specs=[
                    pl.BlockSpec((row_tile, LANES), in_index),
                    pl.BlockSpec((row_tile, LANES), in_index),
                ],
                out_specs=pl.BlockSpec(
                    (1, 1), lambda c, i: (c, 0),
                    memory_space=pltpu.MemorySpace.SMEM),
                scratch_shapes=[pltpu.VMEM((ACC_SUBLANES, LANES), jnp.float32)],
            ),
            compiler_params=pltpu.CompilerParams(
                # If an xprof trace on v7x shows only one TC active, flip the
                # first entry to pltpu.CORE_PARALLEL.
                dimension_semantics=("parallel", "arbitrary"),
                vmem_limit_bytes=_VMEM_LIMIT_BYTES,
                allow_input_fusion=[True, True],
            ),
            cost_estimate=cost,
        )(y2d, yp2d)
        total = total + jnp.sum(partials)

    if n_tail:
        ey = y[n_main:].astype(jnp.float32) - yp[n_main:].astype(jnp.float32)
        e2 = ey * ey
        total = total + jnp.sum(e2 * jax.lax.rsqrt(jnp.float32(1.0) + e2))

    return total * jnp.float32(1.0 / n_true)


def algebraic_loss_ref(y_t, y_prime_t):
    ey = y_t.astype(jnp.float32) - y_prime_t.astype(jnp.float32)
    e2 = ey * ey
    return jnp.mean(e2 / jnp.sqrt(1.0 + e2))


if __name__ == "__main__":
    key = jax.random.PRNGKey(0)
    k1, k2, k3, k4, k5, k6 = jax.random.split(key, 6)

    # Small NCHW-like shape (lane-aligned total size) — interior fast path.
    y = jax.random.normal(k1, (2, 4, 16, 16), dtype=jnp.float32)
    yp = jax.random.normal(k2, (2, 4, 16, 16), dtype=jnp.float32)
    out = jax.block_until_ready(algebraic_loss(y, yp))
    ref = algebraic_loss_ref(y, yp)
    assert jnp.allclose(out, ref, rtol=1e-5, atol=1e-6), (out, ref)

    # Non-128-aligned size — exercises masked tail block + wrapper tail path.
    y = jax.random.normal(k3, (2, 131, 3), dtype=jnp.float32)
    yp = jax.random.normal(k4, (2, 131, 3), dtype=jnp.float32)
    out = jax.block_until_ready(algebraic_loss(y, yp))
    ref = algebraic_loss_ref(y, yp)
    assert jnp.allclose(out, ref, rtol=1e-5, atol=1e-6), (out, ref)

    # Native bf16 inputs stream at half the HBM traffic; kernel upcasts in-register.
    y = jax.random.normal(k5, (2, 4, 8, 64), dtype=jnp.bfloat16)
    yp = jax.random.normal(k6, (2, 4, 8, 64), dtype=jnp.bfloat16)
    out = jax.block_until_ready(algebraic_loss(y, yp))
    ref = algebraic_loss_ref(y, yp)
    assert jnp.allclose(out, ref, rtol=1e-4, atol=1e-5), (out, ref)

    print("KERNEL_OK")
</pallas_src>

<mosaic_0001>
module attributes {stable_mosaic.version = 11 : i64} {
  func.func @_algebraic_loss_kernel(%arg0: i32, %arg1: i32, %arg2: memref<16x128xf32, #tpu.memory_space<vmem>>, %arg3: memref<16x128xf32, #tpu.memory_space<vmem>>, %arg4: memref<1x1xf32, #tpu.memory_space<smem>>, %arg5: memref<8x128xf32, #tpu.memory_space<vmem>>) attributes {dimension_semantics = [#tpu.dimension_semantics<parallel>, #tpu.dimension_semantics<arbitrary>], iteration_bounds = array<i64: 1, 1>, scalar_prefetch = 0 : i64, scratch_operands = 1 : i64, tpu.core_type = #tpu.core_type<tc>, window_params = [{transform_indices = @transform_0, window_bounds = array<i64: 16, 128>}, {transform_indices = @transform_1, window_bounds = array<i64: 16, 128>}, {transform_indices = @transform_2, window_bounds = array<i64: 1, 1>}]} {
    %c0_i32 = arith.constant 0 : i32
    %0 = arith.cmpi eq, %arg1, %c0_i32 : i32
    %1 = arith.extui %0 : i1 to i32
    %c0_i32_0 = arith.constant 0 : i32
    %2 = arith.cmpi ne, %1, %c0_i32_0 : i32
    scf.if %2 {
      %cst = arith.constant 0.000000e+00 : f32
      %18 = vector.broadcast %cst : f32 to vector<8x128xf32>
      %c0 = arith.constant 0 : index
      %c0_9 = arith.constant 0 : index
      %19 = vector.load %arg5[%c0, %c0_9] : memref<8x128xf32, #tpu.memory_space<vmem>>, vector<8x128xf32>
      tpu.vector_store %arg5[%c0, %c0_9], %18 {strides = array<i32>} : memref<8x128xf32, #tpu.memory_space<vmem>>, vector<8x128xf32>,
    } else {
    }
    %c1_i32 = arith.constant 1 : i32
    %3 = arith.muli %arg0, %c1_i32 : i32
    %4 = arith.addi %3, %arg1 : i32
    %c16_i32 = arith.constant 16 : i32
    %5 = arith.muli %4, %c16_i32 : i32
    %c16_i32_1 = arith.constant 16 : i32
    %6 = arith.subi %c16_i32_1, %5 : i32
    %c16_i32_2 = arith.constant 16 : i32
    %7 = arith.cmpi sge, %6, %c16_i32_2 : i32
    %8 = arith.extui %7 : i1 to i32
    %c0_i32_3 = arith.constant 0 : i32
    %9 = arith.cmpi ne, %8, %c0_i32_3 : i32
    scf.if %9 {
      %c0 = arith.constant 0 : index
      %c0_9 = arith.constant 0 : index
      %18 = vector.load %arg2[%c0, %c0_9] : memref<16x128xf32, #tpu.memory_space<vmem>>, vector<16x128xf32>
      %c0_10 = arith.constant 0 : index
      %c0_11 = arith.constant 0 : index
      %19 = vector.load %arg3[%c0_10, %c0_11] : memref<16x128xf32, #tpu.memory_space<vmem>>, vector<16x128xf32>
      %20 = arith.subf %18, %19 : vector<16x128xf32>
      %21 = arith.mulf %20, %20 : vector<16x128xf32>
      %cst = arith.constant 1.000000e+00 : f32
      %22 = vector.broadcast %cst : f32 to vector<16x128xf32>
      %23 = arith.addf %22, %21 : vector<16x128xf32>
      %24 = math.rsqrt %23 : vector<16x128xf32>
      %25 = arith.mulf %21, %24 : vector<16x128xf32>
      %c0_12 = arith.constant 0 : index
      %c0_13 = arith.constant 0 : index
      %26 = vector.load %arg5[%c0_12, %c0_13] : memref<8x128xf32, #tpu.memory_space<vmem>>, vector<8x128xf32>
      %27 = vector.shape_cast %25 : vector<16x128xf32> to vector<2x8x128xf32>
      %cst_14 = arith.constant dense<0.000000e+00> : vector<8x128xf32>
      %28 = vector.multi_reduction <add>, %27, %cst_14 [0] : vector<2x8x128xf32> to vector<8x128xf32>
      %29 = arith.addf %26, %28 : vector<8x128xf32>
      %c0_15 = arith.constant 0 : index
      %c0_16 = arith.constant 0 : index
      %30 = vector.load %arg5[%c0_15, %c0_16] : memref<8x128xf32, #tpu.memory_space<vmem>>, vector<8x128xf32>
      tpu.vector_store %arg5[%c0_15, %c0_16], %29 {strides = array<i32>} : memref<8x128xf32, #tpu.memory_space<vmem>>, vector<8x128xf32>,
    } else {
    }
    %c0_i32_4 = arith.constant 0 : i32
    %10 = arith.cmpi sgt, %6, %c0_i32_4 : i32
    %c16_i32_5 = arith.constant 16 : i32
    %11 = arith.cmpi slt, %6, %c16_i32_5 : i32
    %12 = arith.andi %10, %11 : i1
    %13 = arith.extui %12 : i1 to i32
    %c0_i32_6 = arith.constant 0 : i32
    %14 = arith.cmpi ne, %13, %c0_i32_6 : i32
    scf.if %14 {
      %c0 = arith.constant 0 : index
      %c0_9 = arith.constant 0 : index
      %18 = vector.load %arg2[%c0, %c0_9] : memref<16x128xf32, #tpu.memory_space<vmem>>, vector<16x128xf32>
      %c0_10 = arith.constant 0 : index
      %c0_11 = arith.constant 0 : index
      %19 = vector.load %arg3[%c0_10, %c0_11] : memref<16x128xf32, #tpu.memory_space<vmem>>, vector<16x128xf32>
      %20 = arith.subf %18, %19 : vector<16x128xf32>
      %21 = arith.mulf %20, %20 : vector<16x128xf32>
      %cst = arith.constant 1.000000e+00 : f32
      %22 = vector.broadcast %cst : f32 to vector<16x128xf32>
      %23 = arith.addf %22, %21 : vector<16x128xf32>
      %24 = math.rsqrt %23 : vector<16x128xf32>
      %25 = arith.mulf %21, %24 : vector<16x128xf32>
      %26 = tpu.iota {dimensions = array<i32: 0>} : vector<16x128xi32>
      %27 = vector.broadcast %6 : i32 to vector<16x128xi32>
      %28 = arith.cmpi slt, %26, %27 : vector<16x128xi32>
      %cst_12 = arith.constant 0.000000e+00 : f32
      %29 = vector.broadcast %cst_12 : f32 to vector<16x128xf32>
      %30 = arith.select %28, %25, %29 : vector<16x128xi1>, vector<16x128xf32>
      %c0_13 = arith.constant 0 : index
      %c0_14 = arith.constant 0 : index
      %31 = vector.load %arg5[%c0_13, %c0_14] : memref<8x128xf32, #tpu.memory_space<vmem>>, vector<8x128xf32>
      %32 = vector.shape_cast %30 : vector<16x128xf32> to vector<2x8x128xf32>
      %cst_15 = arith.constant dense<0.000000e+00> : vector<8x128xf32>
      %33 = vector.multi_reduction <add>, %32, %cst_15 [0] : vector<2x8x128xf32> to vector<8x128xf32>
      %34 = arith.addf %31, %33 : vector<8x128xf32>
      %c0_16 = arith.constant 0 : index
      %c0_17 = arith.constant 0 : index
      %35 = vector.load %arg5[%c0_16, %c0_17] : memref<8x128xf32, #tpu.memory_space<vmem>>, vector<8x128xf32>
      tpu.vector_store %arg5[%c0_16, %c0_17], %34 {strides = array<i32>} : memref<8x128xf32, #tpu.memory_space<vmem>>, vector<8x128xf32>,
    } else {
    }
    %c0_i32_7 = arith.constant 0 : i32
    %15 = arith.cmpi eq, %arg1, %c0_i32_7 : i32
    %16 = arith.extui %15 : i1 to i32
    %c0_i32_8 = arith.constant 0 : i32
    %17 = arith.cmpi ne, %16, %c0_i32_8 : i32
    scf.if %17 {
      %c0 = arith.constant 0 : index
      %c0_9 = arith.constant 0 : index
      %18 = vector.load %arg5[%c0, %c0_9] : memref<8x128xf32, #tpu.memory_space<vmem>>, vector<8x128xf32>
      %19 = vector.shape_cast %18 : vector<8x128xf32> to vector<1x8x128xf32>
      %cst = arith.constant dense<0.000000e+00> : vector<1xf32>
      %20 = vector.multi_reduction <add>, %19, %cst [1, 2] : vector<1x8x128xf32> to vector<1xf32>
      %21 = vector.shape_cast %20 : vector<1xf32> to vector<1x1x1xf32>
      %22 = vector.extract %21[0, 0, 0] : f32 from vector<1x1x1xf32>
      %c0_10 = arith.constant 0 : index
      %c0_11 = arith.constant 0 : index
      %23 = memref.load %arg4[%c0_10, %c0_11] : memref<1x1xf32, #tpu.memory_space<smem>>
      memref.store %22, %arg4[%c0_10, %c0_11] : memref<1x1xf32, #tpu.memory_space<smem>>
    } else {
    }
    return
  }
  func.func @transform_0(%arg0: i32, %arg1: i32) -> (i32, i32) {
    %c1_i32 = arith.constant 1 : i32
    %0 = arith.muli %arg0, %c1_i32 : i32
    %1 = arith.addi %0, %arg1 : i32
    %c0_i32 = arith.constant 0 : i32
    %2 = arith.minsi %1, %c0_i32 : i32
    %c0_i32_0 = arith.constant 0 : i32
    %c0_i32_1 = arith.constant 0 : i32
    return %2, %c0_i32_0 : i32, i32
  }
  func.func @transform_1(%arg0: i32, %arg1: i32) -> (i32, i32) {
    %c1_i32 = arith.constant 1 : i32
    %0 = arith.muli %arg0, %c1_i32 : i32
    %1 = arith.addi %0, %arg1 : i32
    %c0_i32 = arith.constant 0 : i32
    %2 = arith.minsi %1, %c0_i32 : i32
    %c0_i32_0 = arith.constant 0 : i32
    %c0_i32_1 = arith.constant 0 : i32
    return %2, %c0_i32_0 : i32, i32
  }
  func.func @transform_2(%arg0: i32, %arg1: i32) -> (i32, i32) {
    %c0_i32 = arith.constant 0 : i32
    %c0_i32_0 = arith.constant 0 : i32
    return %arg0, %c0_i32 : i32, i32
  }
}

</mosaic_0001>

<bundles_post_ra>
// kernel: tpu_custom_call.1
= control target key start
LH: loop header
LB: loop body
LE: loop exit
PB: predicated region body
PF: predicated region fallthrough
CT: control target
= control target key end

     0   :  { %7 = vsyncpa [#allocation4], 0  ;;  %s283_s0 = inlined_call_operand.hbm [shape: f32[16,128], index: 0, kind: input, shape index: {}]   ;;  %s284_s1 = inlined_call_operand.hbm [shape: f32[16,128], index: 1, kind: input, shape index: {}]   ;;  %s285_s2 = inlined_call_operand.hbm [shape: f32[1,1], index: 2, kind: output, shape index: {}]  }
   0x1   :  { %8 = vsyncpa [#allocation7], 0 }
   0x2   :  { %9 = vsyncpa [#allocation5], 0  ;;  %s227_s9 = smov [#allocation3]   ;;  %s167_s13 = scalar_lea.hbm %s283_s0, 256 }
   0x3   :  { %s21_s10 = sshll.u32 %s227_s9, 4  ;;  %p168_p0 = scmp.ne.s32.totalorder %s283_s0, %s167_s13  ;;  %s22_s10 = int_to_ptr.vmem [resolvable:$true] %s21_s10 }
   0x4   :  { %p171_p1 = scmp.lt.u32.totalorder %s167_s13, %s283_s0 }
   0x6   :  { %p173_p2 = pnand %p171_p1, %p168_p0 }
   0x8   :  { %176 = shalt.err (!%p173_p2)
}
   0x9   :  { %s177_s18 = scalar_lea.vmem %s22_s10, 256  ;;  %p182_p4 = scmp.lt.s32.totalorder %s22_s10, %s22_s10 }
   0xa   :  { %p178_p3 = scmp.ne.s32.totalorder %s22_s10, %s177_s18  ;;  %p183_p5 = scmp.lt.s32.totalorder %s177_s18, %s177_s18 }
   0xc   :  { %p184_p6 = por %p183_p5, %p182_p4 }
   0xe   :  { %p185_p7 = pnand %p184_p6, %p178_p3 }
  0x10   :  { %188 = shalt.err (!%p185_p7)
}
  0x11   :  { %s228_s19 = smov 128   ;;  %s229_s20 = smov 8  }
  0x12   :  { %27 = dma.hbm_to_vmem [thread:$0]  %s283_s0, 256, %s22_s10, [#allocation4], %s228_s19, %s228_s19, %s229_s20  }
  0x13   :  { %s230_s23 = smov [#allocation6]   ;;  %s189_s27 = scalar_lea.hbm %s284_s1, 256 }
  0x14   :  { %s39_s24 = sshll.u32 %s230_s23, 4  ;;  %p190_p8 = scmp.ne.s32.totalorder %s284_s1, %s189_s27  ;;  %s40_s24 = int_to_ptr.vmem [resolvable:$true] %s39_s24 }
  0x15   :  { %p193_p9 = scmp.lt.u32.totalorder %s189_s27, %s284_s1 }
  0x17   :  { %p195_p10 = pnand %p193_p9, %p190_p8 }
  0x19   :  { %198 = shalt.err (!%p195_p10)
}
  0x1a   :  { %s199_s4 = scalar_lea.vmem %s40_s24, 256  ;;  %p204_p12 = scmp.lt.s32.totalorder %s40_s24, %s40_s24 }
  0x1b   :  { %p200_p11 = scmp.ne.s32.totalorder %s40_s24, %s199_s4  ;;  %p205_p13 = scmp.lt.s32.totalorder %s199_s4, %s199_s4 }
  0x1d   :  { %p206_p0 = por %p205_p13, %p204_p12 }
  0x1f   :  { %p207_p1 = pnand %p206_p0, %p200_p11 }
  0x21   :  { %210 = shalt.err (!%p207_p1)
}
  0x22   :  { %45 = dma.hbm_to_vmem [thread:$0]  %s284_s1, 256, %s40_s24, [#allocation7], %s228_s19, %s228_s19, %s229_s20  }
  0x23   :  { %221 = dma.done.wait [#allocation4], 256  }
  0x24   :  { %222 = vsyncadd [#allocation4], 4294967040 }
  0x25   :  { %223 = dma.done.wait [#allocation7], 256  }
  0x26   :  { %224 = vsyncadd [#allocation7], 4294967040  ;;  %v72_v0 = vld [vmem:[#allocation3] sm:$0xff]  ;;  %v73_v1 = vld [vmem:[#allocation3 + $0x8] sm:$0xff]  ;;  %s211_s8 = scalar_lea.hbm %s285_s2, 16 }
  0x27   :  { %v74_v2 = vld [vmem:[#allocation6] sm:$0xff]  ;;  %v75_v3 = vld [vmem:[#allocation6 + $0x8] sm:$0xff]  ;;  %p212_p2 = scmp.ne.s32.totalorder %s285_s2, %s211_s8  ;;  %p215_p3 = scmp.lt.u32.totalorder %s211_s8, %s285_s2 }
  0x28   :  { %v76_v4 = vsub.f32 %v72_v0, %v74_v2  ;;  %v77_v5 = vsub.f32 %v73_v1, %v75_v3 }
  0x29   :  { %p217_p4 = pnand %p215_p3, %p212_p2 }
  0x2a   :  { %v78_v6 = vmul.f32 %v76_v4, %v76_v4  ;;  %v79_v7 = vmul.f32 %v77_v5, %v77_v5 }
  0x2c   :  { %v80_v8 = vadd.f32 1.0, %v78_v6  ;;  %v81_v9 = vadd.f32 1.0, %v79_v7 }
  0x2e   :  { %163 = vrsqrt.f32 %v80_v8 }
  0x2f   :  { %165 = vrsqrt.f32 %v81_v9 }
  0x38   :  { %v164_v10 = vpop.eup %163 }
  0x39   :  { %v166_v11 = vpop.eup %165  ;;  %v84_v12 = vmul.f32 %v164_v10, %v78_v6 }
  0x3a   :  { %v85_v13 = vmul.f32 %v166_v11, %v79_v7 }
  0x3c   :  { %v87_v14 = vadd.f32 %v85_v13, %v84_v12 }
  0x3e   :  { %126 = vadd.xlane.f32.xlu0 %v87_v14 }
  0xcb   :  { %v127_v15 = vpop.xlane.xlu0 %126 }
  0xcc   :  { %v128_v16 = vrot.slane %v127_v15, 4 }
  0xce   :  { %v129_v17 = vadd.f32 %v128_v16, %v127_v15 }
  0xd0   :  { %v130_v18 = vrot.slane %v129_v17, 2 }
  0xd2   :  { %v131_v19 = vadd.f32 %v130_v18, %v129_v17 }
  0xd4   :  { %v132_v20 = vrot.slane %v131_v19, 1 }
  0xd6   :  { %v133_v21 = vadd.f32 %v132_v20, %v131_v19 }
  0xd8   :  { %156 = vpush %v133_v21 }
 0x109   :  { %s157_s1 = spop %156 }
 0x10a   :  { %136 = sst [smem:[#allocation8]] %s157_s1 }
 0x10b   :  { %220 = shalt.err (!%p217_p4)
}
 0x10c   :  { %s231_s13 = smov [#allocation8]  }
 0x10d   :  { %144 = dma.smem_to_hbm %s231_s13, 16, %s285_s2, [#allocation5]  }
 0x10e   :  { %225 = dma.done.wait [#allocation5], 16  }
 0x10f   :  { %226 = vsyncadd [#allocation5], 4294967280 }
 0x110   :  { %148 = sfence }
 0x111   :  { %149 = vsyncpa [#allocation4], 1 }
 0x112   :  { %150 = vsyncpa [#allocation7], 1 }
 0x113   :  { %151 = vsyncpa [#allocation5], 1 }

</bundles_post_ra>
